<compile_context>
chip_gen: v7x
topology: tpu7x:2x2x1
jax: 0.10.0
libtpu: 0.0.40
codegen_flags: <defaults>
</compile_context>

<pallas_src>
import functools

import jax
import jax.numpy as jnp
import numpy as np
from jax.experimental import pallas as pl
from jax.experimental.pallas import tpu as pltpu

P_DROP = 0.5  # PreNet default dropout prob (always applied, training=True)


def prenet_kernel(x_ref, w1_ref, b1_ref, w2_ref, b2_ref, r1_ref, r2_ref,
                  o_ref, *, thresh):
    """x:(TB,in) bf16, w1:(in,f1) bf16, b1:(1,f1) f32 (scale pre-folded),
    w2:(f1,f2) bf16, b2:(1,f2) f32, r1:(TB,f1) u32, r2:(TB,f2) u32."""
    thr = jnp.uint32(thresh)
    zero = jnp.float32(0.0)

    # fc1 (bf16 MXU matmul, f32 accumulate) + bias + relu + dropout mask
    h = jnp.dot(x_ref[...], w1_ref[...], preferred_element_type=jnp.float32)
    h = jnp.maximum(h + b1_ref[...], zero)
    h = jnp.where(r1_ref[...] < thr, h, zero)

    # fc2 + bias + relu + dropout mask
    y = jnp.dot(h.astype(w2_ref.dtype), w2_ref[...],
                preferred_element_type=jnp.float32)
    y = jnp.maximum(y + b2_ref[...], zero)
    y = jnp.where(r2_ref[...] < thr, y, zero)

    o_ref[...] = y.astype(o_ref.dtype)


def _pick_batch_tile(B):
    # Whole batch when small; otherwise the largest divisor <= 256 (MXU M dim).
    for t in (256, 128, 64, 32, 16, 8):
        if B >= t and B % t == 0:
            return t
    return B  # tiny/odd batch: single block


@functools.partial(jax.jit, static_argnames=("p", "batch_tile"))
def prenet_forward(x, w1, b1, w2, b2, key, *, p=P_DROP, batch_tile=None):
    """x: (B, in_dims) f32. Weights stored as (in, out). Returns (B, fc2) f32."""
    B, in_dims = x.shape
    f1 = w1.shape[1]
    f2 = w2.shape[1]

    keep = 1.0 - p
    assert 0.0 < keep <= 1.0
    # keep element iff uniform u32 < keep * 2^32 (clamped to avoid u32 overflow)
    thresh = min(int(keep * (2.0 ** 32)), 2 ** 32 - 1)

    if batch_tile is None:
        batch_tile = _pick_batch_tile(B)
    assert B % batch_tile == 0
    grid = (B // batch_tile,)

    # Fold the inverted-dropout scale into weights/biases; cast mm inputs bf16.
    scale = jnp.float32(1.0 / keep)
    xb = x.astype(jnp.bfloat16)
    w1s = (w1 * scale).astype(jnp.bfloat16)
    b1s = (b1 * scale).reshape(1, f1).astype(jnp.float32)
    w2s = (w2 * scale).astype(jnp.bfloat16)
    b2s = (b2 * scale).reshape(1, f2).astype(jnp.float32)

    # Precomputed dropout bits (uint32), one per activation element.
    k1, k2 = jax.random.split(key)
    r1 = jax.random.bits(k1, (B, f1), dtype=jnp.uint32)
    r2 = jax.random.bits(k2, (B, f2), dtype=jnp.uint32)

    kernel = functools.partial(prenet_kernel, thresh=thresh)

    return pl.pallas_call(
        kernel,
        out_shape=jax.ShapeDtypeStruct((B, f2), jnp.float32),
        grid_spec=pltpu.PrefetchScalarGridSpec(
            num_scalar_prefetch=0,
            grid=grid,
            in_specs=[
                pl.BlockSpec((batch_tile, in_dims), lambda i: (i, 0)),  # x tile
                pl.BlockSpec((in_dims, f1), lambda i: (0, 0)),          # w1 (resident)
                pl.BlockSpec((1, f1), lambda i: (0, 0)),                # b1
                pl.BlockSpec((f1, f2), lambda i: (0, 0)),               # w2 (resident)
                pl.BlockSpec((1, f2), lambda i: (0, 0)),                # b2
                pl.BlockSpec((batch_tile, f1), lambda i: (i, 0)),       # dropout bits 1
                pl.BlockSpec((batch_tile, f2), lambda i: (i, 0)),       # dropout bits 2
            ],
            out_specs=pl.BlockSpec((batch_tile, f2), lambda i: (i, 0)),
        ),
        compiler_params=pltpu.CompilerParams(
            dimension_semantics=("parallel",),  # independent batch tiles
        ),
    )(xb, w1s, b1s, w2s, b2s, r1, r2)


def init_prenet_params(key, in_dims, fc1_dims=256, fc2_dims=128):
    """nn.Linear-style init U(-1/sqrt(fan_in), +1/sqrt(fan_in)); (in, out) layout."""
    k1, k2, k3, k4 = jax.random.split(key, 4)
    bnd1 = 1.0 / jnp.sqrt(in_dims)
    bnd2 = 1.0 / jnp.sqrt(fc1_dims)
    w1 = jax.random.uniform(k1, (in_dims, fc1_dims), jnp.float32, -bnd1, bnd1)
    b1 = jax.random.uniform(k2, (fc1_dims,), jnp.float32, -bnd1, bnd1)
    w2 = jax.random.uniform(k3, (fc1_dims, fc2_dims), jnp.float32, -bnd2, bnd2)
    b2 = jax.random.uniform(k4, (fc2_dims,), jnp.float32, -bnd2, bnd2)
    return w1, b1, w2, b2


def prenet_reference(x, w1, b1, w2, b2, key, p=P_DROP):
    """Pure-JAX reference with the same dropout bits and bf16-rounded mm inputs."""
    keep = 1.0 - p
    thr = jnp.uint32(min(int(keep * (2.0 ** 32)), 2 ** 32 - 1))
    k1, k2 = jax.random.split(key)
    r1 = jax.random.bits(k1, (x.shape[0], w1.shape[1]), dtype=jnp.uint32)
    r2 = jax.random.bits(k2, (x.shape[0], w2.shape[1]), dtype=jnp.uint32)

    xb = x.astype(jnp.bfloat16).astype(jnp.float32)
    w1b = w1.astype(jnp.bfloat16).astype(jnp.float32)
    w2b = w2.astype(jnp.bfloat16).astype(jnp.float32)

    h = jnp.maximum(xb @ w1b + b1, 0.0)
    h = jnp.where(r1 < thr, h / keep, 0.0)
    h = h.astype(jnp.bfloat16).astype(jnp.float32)
    y = jnp.maximum(h @ w2b + b2, 0.0)
    y = jnp.where(r2 < thr, y / keep, 0.0)
    return y


if __name__ == "__main__":
    key = jax.random.PRNGKey(0)
    kx, kp, kd = jax.random.split(key, 3)

    B, in_dims, fc1_dims, fc2_dims = 16, 32, 256, 128
    x = jax.random.normal(kx, (B, in_dims), jnp.float32)
    w1, b1, w2, b2 = init_prenet_params(kp, in_dims, fc1_dims, fc2_dims)

    out = prenet_forward(x, w1, b1, w2, b2, kd)
    out = jax.block_until_ready(out)

    # Sanity checks + comparison against a pure-JAX reference using the same
    # dropout bits (bf16 matmul inputs, f32 accumulation -> loose tolerance).
    assert out.shape == (B, fc2_dims)
    assert bool(jnp.all(jnp.isfinite(out)))
    assert bool(jnp.all(out >= 0.0))
    zero_frac = float(jnp.mean(out == 0.0))
    assert 0.2 < zero_frac < 0.99, f"unexpected dropout zero fraction {zero_frac}"

    ref = jax.block_until_ready(prenet_reference(x, w1, b1, w2, b2, kd))
    np.testing.assert_allclose(np.asarray(out), np.asarray(ref),
                               rtol=5e-2, atol=5e-2)

    print("KERNEL_OK")
</pallas_src>

<mosaic_0001>
module attributes {stable_mosaic.version = 11 : i64} {
  func.func @prenet_kernel(%arg0: i32, %arg1: memref<16x32xbf16, #tpu.memory_space<vmem>>, %arg2: memref<32x256xbf16, #tpu.memory_space<vmem>>, %arg3: memref<1x256xf32, #tpu.memory_space<vmem>>, %arg4: memref<256x128xbf16, #tpu.memory_space<vmem>>, %arg5: memref<1x128xf32, #tpu.memory_space<vmem>>, %arg6: memref<16x256xi32, #tpu.memory_space<vmem>>, %arg7: memref<16x128xi32, #tpu.memory_space<vmem>>, %arg8: memref<16x128xf32, #tpu.memory_space<vmem>>) attributes {dimension_semantics = [#tpu.dimension_semantics<parallel>], iteration_bounds = array<i64: 1>, scalar_prefetch = 0 : i64, scratch_operands = 0 : i64, tpu.core_type = #tpu.core_type<tc>, window_params = [{transform_indices = @transform_0, window_bounds = array<i64: 16, 32>}, {pipeline_mode = #tpu.pipeline_mode<synchronous>, transform_indices = @transform_1, window_bounds = array<i64: 32, 256>}, {pipeline_mode = #tpu.pipeline_mode<synchronous>, transform_indices = @transform_2, window_bounds = array<i64: 1, 256>}, {pipeline_mode = #tpu.pipeline_mode<synchronous>, transform_indices = @transform_3, window_bounds = array<i64: 256, 128>}, {pipeline_mode = #tpu.pipeline_mode<synchronous>, transform_indices = @transform_4, window_bounds = array<i64: 1, 128>}, {transform_indices = @transform_5, window_bounds = array<i64: 16, 256>}, {transform_indices = @transform_6, window_bounds = array<i64: 16, 128>}, {transform_indices = @transform_7, window_bounds = array<i64: 16, 128>}]} {
    %c0 = arith.constant 0 : index
    %c0_0 = arith.constant 0 : index
    %0 = vector.load %arg1[%c0, %c0_0] : memref<16x32xbf16, #tpu.memory_space<vmem>>, vector<16x32xbf16>
    %c0_1 = arith.constant 0 : index
    %c0_2 = arith.constant 0 : index
    %1 = vector.load %arg2[%c0_1, %c0_2] : memref<32x256xbf16, #tpu.memory_space<vmem>>, vector<32x256xbf16>
    %cst = arith.constant dense<0.000000e+00> : vector<16x256xf32>
    %2 = tpu.matmul %0, %1, %cst {dimension_numbers = #tpu.dot_dimension_numbers<[1], [0], [0], [1], [0, 0, 1, 1], [], []>} : vector<16x32xbf16>, vector<32x256xbf16>, vector<16x256xf32> -> vector<16x256xf32>
    %c0_3 = arith.constant 0 : index
    %c0_4 = arith.constant 0 : index
    %3 = vector.load %arg3[%c0_3, %c0_4] : memref<1x256xf32, #tpu.memory_space<vmem>>, vector<1x256xf32>
    %4 = vector.broadcast %3 : vector<1x256xf32> to vector<16x256xf32>
    %5 = arith.addf %2, %4 : vector<16x256xf32>
    %cst_5 = arith.constant 0.000000e+00 : f32
    %6 = vector.broadcast %cst_5 : f32 to vector<16x256xf32>
    %7 = arith.maximumf %5, %6 : vector<16x256xf32>
    %c0_6 = arith.constant 0 : index
    %c0_7 = arith.constant 0 : index
    %8 = vector.load %arg6[%c0_6, %c0_7] : memref<16x256xi32, #tpu.memory_space<vmem>>, vector<16x256xi32>
    %c-2147483648_i32 = arith.constant -2147483648 : i32
    %9 = vector.broadcast %c-2147483648_i32 : i32 to vector<16x256xi32>
    %10 = arith.cmpi ult, %8, %9 : vector<16x256xi32>
    %cst_8 = arith.constant 0.000000e+00 : f32
    %11 = vector.broadcast %cst_8 : f32 to vector<16x256xf32>
    %12 = arith.select %10, %7, %11 : vector<16x256xi1>, vector<16x256xf32>
    %13 = arith.truncf %12 : vector<16x256xf32> to vector<16x256xbf16>
    %c0_9 = arith.constant 0 : index
    %c0_10 = arith.constant 0 : index
    %14 = vector.load %arg4[%c0_9, %c0_10] : memref<256x128xbf16, #tpu.memory_space<vmem>>, vector<256x128xbf16>
    %cst_11 = arith.constant dense<0.000000e+00> : vector<16x128xf32>
    %15 = tpu.matmul %13, %14, %cst_11 {dimension_numbers = #tpu.dot_dimension_numbers<[1], [0], [0], [1], [0, 0, 1, 1], [], []>} : vector<16x256xbf16>, vector<256x128xbf16>, vector<16x128xf32> -> vector<16x128xf32>
    %c0_12 = arith.constant 0 : index
    %c0_13 = arith.constant 0 : index
    %16 = vector.load %arg5[%c0_12, %c0_13] : memref<1x128xf32, #tpu.memory_space<vmem>>, vector<1x128xf32>
    %17 = vector.broadcast %16 : vector<1x128xf32> to vector<16x128xf32>
    %18 = arith.addf %15, %17 : vector<16x128xf32>
    %cst_14 = arith.constant 0.000000e+00 : f32
    %19 = vector.broadcast %cst_14 : f32 to vector<16x128xf32>
    %20 = arith.maximumf %18, %19 : vector<16x128xf32>
    %c0_15 = arith.constant 0 : index
    %c0_16 = arith.constant 0 : index
    %21 = vector.load %arg7[%c0_15, %c0_16] : memref<16x128xi32, #tpu.memory_space<vmem>>, vector<16x128xi32>
    %c-2147483648_i32_17 = arith.constant -2147483648 : i32
    %22 = vector.broadcast %c-2147483648_i32_17 : i32 to vector<16x128xi32>
    %23 = arith.cmpi ult, %21, %22 : vector<16x128xi32>
    %cst_18 = arith.constant 0.000000e+00 : f32
    %24 = vector.broadcast %cst_18 : f32 to vector<16x128xf32>
    %25 = arith.select %23, %20, %24 : vector<16x128xi1>, vector<16x128xf32>
    %c0_19 = arith.constant 0 : index
    %c0_20 = arith.constant 0 : index
    %26 = vector.load %arg8[%c0_19, %c0_20] : memref<16x128xf32, #tpu.memory_space<vmem>>, vector<16x128xf32>
    tpu.vector_store %arg8[%c0_19, %c0_20], %25 {strides = array<i32>} : memref<16x128xf32, #tpu.memory_space<vmem>>, vector<16x128xf32>,
    return
  }
  func.func @transform_0(%arg0: i32) -> (i32, i32) {
    %c0_i32 = arith.constant 0 : i32
    %c0_i32_0 = arith.constant 0 : i32
    return %arg0, %c0_i32 : i32, i32
  }
  func.func @transform_1(%arg0: i32) -> (i32, i32) {
    %c0_i32 = arith.constant 0 : i32
    %c0_i32_0 = arith.constant 0 : i32
    %c0_i32_1 = arith.constant 0 : i32
    return %c0_i32, %c0_i32_0 : i32, i32
  }
  func.func @transform_2(%arg0: i32) -> (i32, i32) {
    %c0_i32 = arith.constant 0 : i32
    %c0_i32_0 = arith.constant 0 : i32
    %c0_i32_1 = arith.constant 0 : i32
    return %c0_i32, %c0_i32_0 : i32, i32
  }
  func.func @transform_3(%arg0: i32) -> (i32, i32) {
    %c0_i32 = arith.constant 0 : i32
    %c0_i32_0 = arith.constant 0 : i32
    %c0_i32_1 = arith.constant 0 : i32
    return %c0_i32, %c0_i32_0 : i32, i32
  }
  func.func @transform_4(%arg0: i32) -> (i32, i32) {
    %c0_i32 = arith.constant 0 : i32
    %c0_i32_0 = arith.constant 0 : i32
    %c0_i32_1 = arith.constant 0 : i32
    return %c0_i32, %c0_i32_0 : i32, i32
  }
  func.func @transform_5(%arg0: i32) -> (i32, i32) {
    %c0_i32 = arith.constant 0 : i32
    %c0_i32_0 = arith.constant 0 : i32
    return %arg0, %c0_i32 : i32, i32
  }
  func.func @transform_6(%arg0: i32) -> (i32, i32) {
    %c0_i32 = arith.constant 0 : i32
    %c0_i32_0 = arith.constant 0 : i32
    return %arg0, %c0_i32 : i32, i32
  }
  func.func @transform_7(%arg0: i32) -> (i32, i32) {
    %c0_i32 = arith.constant 0 : i32
    %c0_i32_0 = arith.constant 0 : i32
    return %arg0, %c0_i32 : i32, i32
  }
}

</mosaic_0001>

<bundles_post_ra>
// kernel: prenet_forward.3
= control target key start
LH: loop header
LB: loop body
LE: loop exit
PB: predicated region body
PF: predicated region fallthrough
CT: control target
= control target key end

     0   :  { %v440_v2 = vmov 0   ;;  %vm71_vm0 = vcmask 261120   ;;  %s583_s0 = inlined_call_operand.vmem [shape: bf16[16,32], index: 0, kind: input, shape index: {}]   ;;  %s584_s1 = inlined_call_operand.vmem [shape: bf16[32,256], index: 1, kind: input, shape index: {}]   ;;  %s585_s2 = inlined_call_operand.vmem [shape: f32[1,256], index: 2, kind: input, shape index: {}]   ;;  %s586_s3 = inlined_call_operand.vmem [shape: bf16[256,128], index: 3, kind: input, shape index: {}]   ;;  %s587_s4 = inlined_call_operand.vmem [shape: f32[1,128], index: 4, kind: input, shape index: {}]   ;;  %s588_s5 = inlined_call_operand.vmem [shape: u32[16,256], index: 5, kind: input, shape index: {}]   ;;  %s589_s6 = inlined_call_operand.vmem [shape: u32[16,128], index: 6, kind: input, shape index: {}]   ;;  %s590_s7 = inlined_call_operand.hbm [shape: f32[16,128], index: 7, kind: output, shape index: {}]  }
   0x1   :  { %v393_v0 = vld [vmem:[%s584_s1 + $0x4] ss:$8 sps:$4 sm:$0xff]   ;;  %v395_v1 = vld [vmem:[%s584_s1] ss:$8 sps:$4 sm:$0xff]   ;;  %107 = vmatprep.mubr.bf16.mxu0 %v440_v2  ;;  %v396_v3 = vld [vmem:[%s584_s1 + $0x14] ss:$8 sps:$4 sm:$0xff]  }
   0x2   :  { %75 = vmatprep.subr.bf16.mxu0 %v393_v0  ;;  %v398_v4 = vld [vmem:[%s584_s1 + $0x10] ss:$8 sps:$4 sm:$0xff]   ;;  %v399_v5 = vld [vmem:[%s583_s0] sm:$0xff]   ;;  %v402_v8 = vld [vmem:[%s586_s3 + $0x48] sm:$0xff]  }
   0x3   :  { %76 = vmatpush1.bf16.msra.mxu0 %v395_v1  ;;  %v400_v6 = vld [vmem:[%s586_s3 + $0x40] sm:$0xff]   ;;  %v403_v9 = vld [vmem:[%s586_s3 + $0x8] sm:$0xff]   ;;  %v404_v10 = vld [vmem:[%s586_s3 + $0x50] sm:$0xff]  }
   0x4   :  { %77 = vmatprep.subr.bf16.mxu0 %v396_v3  ;;  %v401_v7 = vld [vmem:[%s586_s3] sm:$0xff]   ;;  %367 = vmatprep.subr.bf16.mxu1 %v400_v6  ;;  %v405_v11 = vld [vmem:[%s586_s3 + $0x10] sm:$0xff]   ;;  %v406_v12 = vld [vmem:[%s586_s3 + $0x58] sm:$0xff]  }
   0x5   :  { %368 = vmatpush3.bf16.msra.mxu1 %v401_v7  ;;  %v407_v13 = vld [vmem:[%s586_s3 + $0x18] sm:$0xff]   ;;  %v408_v14 = vld [vmem:[%s586_s3 + $0x60] sm:$0xff]  }
   0x6   :  { %369 = vmatprep.subr.bf16.mxu1 %v402_v8 }
   0x7   :  { %78 = vmatpush1.bf16.msra.mxu0 %v398_v4 }
   0x9   :  { %370 = vmatpush3.bf16.msra.mxu1 %v403_v9 }
   0xa   :  { %343 = vmatmul.mubr.msk.bf16.vlgmr.msra.gmra.mrb[0].mxu0 %vm71_vm0, %v399_v5  ;;  %371 = vmatprep.subr.bf16.mxu1 %v404_v10 }
   0xd   :  { %372 = vmatpush3.bf16.msra.mxu1 %v405_v11 }
   0xe   :  { %373 = vmatprep.subr.bf16.mxu1 %v406_v12 }
   0xf   :  { %12 = vsyncpa [#allocation3], 0  ;;  %v409_v15 = vld [vmem:[%s586_s3 + $0x20] sm:$0xff]   ;;  %v410_v16 = vld [vmem:[%s586_s3 + $0x68] sm:$0xff]   ;;  %v36_v22 = vlaneseq  ;;  %s441_s29 = smov [#allocation2]  }
  0x10   :  { %v411_v17 = vld [vmem:[%s586_s3 + $0x28] sm:$0xff]   ;;  %v412_v18 = vld [vmem:[%s586_s3 + $0x70] sm:$0xff]   ;;  %v414_v20 = vld [vmem:[%s586_s3 + $0x78] sm:$0xff]   ;;  %s327_s30 = sshll.u32 %s441_s29, 4  ;;  %s328_s30 = int_to_ptr.vmem [resolvable:$true] %s327_s30 }
  0x11   :  { %374 = vmatpush3.bf16.msra.mxu1 %v407_v13  ;;  %v413_v19 = vld [vmem:[%s586_s3 + $0x30] sm:$0xff]   ;;  %v415_v21 = vld [vmem:[%s586_s3 + $0x38] sm:$0xff]   ;;  %v37_v23 = vshrl.u32 %v36_v22, 7  ;;  %v34_v25 = vld [vmem:[%s585_s2] sm:$0x3]  ;;  %p421_p1 = scmp.lt.s32.totalorder %s328_s30, %s328_s30 }
  0x12   :  { %375 = vmatprep.subr.bf16.mxu1 %v408_v14  ;;  %v123_v32 = vld [vmem:[%s588_s5 + $0x8] sm:$0xff]  ;;  %v125_v33 = vld [vmem:[%s588_s5 + $0x18] sm:$0xff]  ;;  %v122_v36 = vld [vmem:[%s588_s5] sm:$0xff] }
  0x13   :  { %v38_v24 = vsub.s32 0, %v37_v23  ;;  %v42_v26 = vsub.s32 1, %v37_v23  ;;  %v124_v37 = vld [vmem:[%s588_s5 + $0x10] sm:$0xff]  ;;  %vm127_vm1 = vcmp.lt.u32.totalorder %v123_v32, 2147483648  ;;  %vm129_vm2 = vcmp.lt.u32.totalorder %v125_v33, 2147483648  ;;  %v314_v51 = vld [vmem:[%s589_s6] sm:$0xff] }
  0x14   :  { %vm126_vm3 = vcmp.lt.u32.totalorder %v122_v36, 2147483648  ;;  %vm128_vm4 = vcmp.lt.u32.totalorder %v124_v37, 2147483648  ;;  %vm361_vm5 = vmpackc.low %vm129_vm2, %vm127_vm1  ;;  %v344_v48 = vld [vmem:[%s587_s4] ss:$0 sm:$0xff]  ;;  %v315_v56 = vld [vmem:[%s589_s6 + $0x8] sm:$0xff]  ;;  %vm316_vm7 = vcmp.lt.u32.totalorder %v314_v51, 2147483648 }
  0x15   :  { %376 = vmatpush3.bf16.msra.mxu1 %v409_v15  ;;  %v39_v27 = vrot.slane %v34_v25, %v38_v24  ;;  %v43_v28 = vrot.slane %v34_v25, %v42_v26  ;;  %vm364_vm6 = vmpackc.low %vm128_vm4, %vm126_vm3  ;;  %vm317_vm8 = vcmp.lt.u32.totalorder %v315_v56, 2147483648  ;;  %s416_s4 = scalar_lea.vmem %s328_s30, 256 }
  0x16   :  { %377 = vmatprep.subr.bf16.mxu1 %v410_v16  ;;  %p417_p0 = scmp.ne.s32.totalorder %s328_s30, %s416_s4  ;;  %p422_p2 = scmp.lt.s32.totalorder %s416_s4, %s416_s4 }
  0x18   :  { %p423_p3 = por %p422_p2, %p421_p1 }
  0x19   :  { %378 = vmatpush3.bf16.msra.mxu1 %v411_v17 }
  0x1a   :  { %379 = vmatprep.subr.bf16.mxu1 %v412_v18  ;;  %p424_p4 = pnand %p423_p3, %p417_p0 }
  0x1d   :  { %380 = vmatpush3.bf16.msra.mxu1 %v413_v19 }
  0x1e   :  { %381 = vmatprep.subr.bf16.mxu1 %v414_v20 }
  0x21   :  { %382 = vmatpush3.bf16.msra.mxu1 %v415_v21 }
  0xdd   :  { %v109_v29 = vpop.f32.mrb[0].mxu0 }
  0xde   :  { %v110_v30 = vadd.f32 %v109_v29, %v39_v27  ;;  %v111_v31 = vpop.f32.mrb[1].mxu0 }
  0xdf   :  { %v112_v34 = vadd.f32 %v111_v31, %v43_v28  ;;  %v113_v35 = vpop.f32.mrb[2].mxu0 }
  0xe0   :  { %v114_v38 = vadd.f32 %v113_v35, %v39_v27  ;;  %v115_v39 = vpop.f32.mrb[3].mxu0  ;;  %v118_v41 = vmax.f32 %v110_v30, 0.0 }
  0xe1   :  { %v116_v40 = vadd.f32 %v115_v39, %v43_v28  ;;  %v119_v43 = vmax.f32 %v112_v34, 0.0 }
  0xe2   :  { %v120_v42 = vmax.f32 %v114_v38, 0.0 }
  0xe3   :  { %v121_v44 = vmax.f32 %v116_v40, 0.0 }
  0xe4   :  { %v365_v45 = vpack.c.bf16 %v120_v42, %v118_v41 }
  0xe5   :  { %v362_v46 = vpack.c.bf16 %v121_v44, %v119_v43 }
  0xe7   :  { %363 = vmatprep.mubr.msk.bf16.mxu1 %vm361_vm5, %v362_v46 }
  0xe8   :  { %366 = vmatmul.mubr.msk.bf16.vlgmr.msra.gmra.mrb[0].mxu1 %vm364_vm6, %v365_v45 }
 0x1bb   :  { %v383_v47 = vpop.f32.mrb[0].mxu1 }
 0x1bc   :  { %v384_v49 = vpop.f32.mrb[1].mxu1 }
 0x1bd   :  { %v385_v50 = vadd.f32 %v384_v49, %v383_v47  ;;  %v386_v52 = vpop.f32.mrb[2].mxu1 }
 0x1be   :  { %v387_v53 = vpop.f32.mrb[3].mxu1 }
 0x1bf   :  { %v306_v54 = vadd.f32 %v385_v50, %v344_v48  ;;  %v388_v55 = vadd.f32 %v387_v53, %v386_v52 }
 0x1c1   :  { %v312_v57 = vmax.f32 %v306_v54, 0.0  ;;  %v309_v58 = vadd.f32 %v388_v55, %v344_v48 }
 0x1c3   :  { %v318_v59 = vsel %vm316_vm7, %v312_v57, 0.0  ;;  %v313_v60 = vmax.f32 %v309_v58, 0.0 }
 0x1c4   :  { %320 = vst [vmem:[#allocation2] sm:$0xff] %v318_v59 }
 0x1c5   :  { %v319_v61 = vsel %vm317_vm8, %v313_v60, 0.0 }
 0x1c6   :  { %321 = vst [vmem:[#allocation2 + $0x8] sm:$0xff] %v319_v61 }
 0x1c7   :  { %427 = shalt.err (!%p424_p4)
}
 0x1c8   :  { %s428_s9 = scalar_lea.hbm %s590_s7, 256 }
 0x1c9   :  { %p429_p5 = scmp.ne.s32.totalorder %s590_s7, %s428_s9  ;;  %p432_p6 = scmp.lt.u32.totalorder %s428_s9, %s590_s7 }
 0x1cb   :  { %p434_p7 = pnand %p432_p6, %p429_p5 }
 0x1cd   :  { %437 = shalt.err (!%p434_p7)
}
 0x1ce   :  { %s442_s14 = smov 128   ;;  %s443_s15 = smov 8  }
 0x1cf   :  { %333 = dma.vmem_to_hbm [thread:$0]  %s328_s30, 256, %s590_s7, [#allocation3], %s442_s14, %s442_s14, %s443_s15  }
 0x1d0   :  { %438 = dma.done.wait [#allocation3], 256  }
 0x1d1   :  { %439 = vsyncadd [#allocation3], 4294967040 }
 0x1d2   :  { %337 = vsyncpa [#allocation3], 1 }

</bundles_post_ra>
